<compile_context>
chip_gen: v6e
topology: v6e:2x2x1
jax: 0.10.0
libtpu: 0.0.40
codegen_flags: <defaults>
</compile_context>

<pallas_src>
import functools

import jax
import jax.numpy as jnp
from jax.experimental import pallas as pl
from jax.experimental.pallas import tpu as pltpu


def _attention_kernel(x_ref, a_ref, wt_ref, bias_ref, c_ref, o_ref,
                      xp_s, acc_s, *, num_heads, head_dim, kv_tile,
                      compute_dtype):
    """One (batch-tile, kv-tile) grid step.

    Block shapes seen by the kernel:
      x_ref    : (bt, N, D_in)   compute_dtype  (kv-invariant, stays resident)
      a_ref    : (bt, N, tk)     float32        (adjacency columns of this kv tile)
      wt_ref   : (D_in, H*d)     compute_dtype  (pre-transposed, head-fused W)
      bias_ref : (1, 1, H*d)     float32
      c_ref    : (H, d, d)       compute_dtype
      o_ref    : (bt, N, H*d)    float32        (kv-invariant)
      xp_s     : VMEM (bt, N, H*d) f32 — projected X (computed once per batch tile)
      acc_s    : VMEM (bt, N, H*d) f32 — output accumulator over kv tiles
    """
    k = pl.program_id(1)

    @pl.when(k == 0)
    def _init():
        # Head-fused projection: one lane-dense (bt*N, D_in) x (D_in, H*d)
        # MXU matmul, f32 accumulation, no transposes.
        xp = jnp.einsum('bnk,kf->bnf', x_ref[...], wt_ref[...],
                        preferred_element_type=jnp.float32)
        xp_s[...] = xp + bias_ref[...]
        acc_s[...] = jnp.zeros_like(acc_s)

    a = a_ref[...]                                        # (bt, N, tk) f32
    kv0 = pl.multiple_of(k * kv_tile, kv_tile)            # aligned kv row offset

    head_out = []
    for h in range(num_heads):                            # static unroll (H small)
        lo, hi = h * head_dim, (h + 1) * head_dim
        xp_h = xp_s[:, :, lo:hi].astype(compute_dtype)                     # (bt, N, d)
        xp_kv = xp_s[:, pl.ds(kv0, kv_tile), lo:hi].astype(compute_dtype)  # (bt, tk, d)
        # einsum('akj,ij->aki'): contract last-vs-last, no materialized C^T.
        xc = jnp.einsum('bnj,ij->bni', xp_h, c_ref[h],
                        preferred_element_type=jnp.float32)                # (bt, N, d)
        # scores for this kv tile: (Xp C^T) @ Xp_kv^T, last-vs-last contraction.
        s = jnp.einsum('bni,bmi->bnm', xc.astype(compute_dtype), xp_kv,
                       preferred_element_type=jnp.float32)                 # (bt, N, tk)
        # attn = dropout(tanh(A * S)); dropout = identity at inference (f32 math).
        # TODO(synk): training-mode dropout (stochastic mask) not implemented.
        m = jnp.tanh(a * s)
        head_out.append(
            jnp.einsum('bnm,bmd->bnd', m.astype(compute_dtype), xp_kv,
                       preferred_element_type=jnp.float32))                # (bt, N, d)

    # Single lane-dense accumulate across all heads (heads contiguous in lanes).
    acc_s[...] += jnp.concatenate(head_out, axis=-1)

    @pl.when(k == pl.num_programs(1) - 1)
    def _finalize():
        # ReLU(concat(heads)) == concat(ReLU(heads)); one lane-dense store.
        o_ref[...] = jnp.maximum(acc_s[...], 0.0).astype(o_ref.dtype)


def attention_forward(X, A, W, bias, C, *, compute_dtype=jnp.bfloat16,
                      batch_tile=None, kv_tile=None):
    """X: (B, N, D_in), A: (B, N, N), W: (H, d, D_in), bias: (H, 1, d),
    C: (H, d, d)  ->  (B, N, H*d) float32 (== torch.cat(heads, dim=2))."""
    B, N, D_in = X.shape
    H, d, _ = W.shape
    Hd = H * d

    # Head-fused, pre-transposed projection weight: column block h*d:(h+1)*d is
    # W[h].T, so the fused matmul output is already the concatenated layout.
    Wt = jnp.transpose(W, (2, 0, 1)).reshape(D_in, Hd)
    bias_f = bias.reshape(1, 1, Hd).astype(jnp.float32)

    # KV (reduction) tile along the second N of the (N, N) score matrix.
    if kv_tile is None:
        kv_tile = N if N <= 512 else 512
    assert N % kv_tile == 0 and (kv_tile == N or kv_tile % 128 == 0)
    nk = N // kv_tile

    # Pack batches per grid step while the f32 A tile stays <= ~2 MiB (fills
    # sublanes / MXU rows when N is tiny, keeps VMEM small when N is large).
    if batch_tile is None:
        batch_tile = 1
        for cand in range(B, 0, -1):
            if B % cand == 0 and cand * N * kv_tile * 4 <= (2 << 20):
                batch_tile = cand
                break
    bt = batch_tile
    assert B % bt == 0

    # Explicit scoped-VMEM budget: double-buffered blocks + scratches, with
    # headroom, clamped to stay inside v7x's 64 MiB physical VMEM.
    c_bytes = jnp.dtype(compute_dtype).itemsize
    block_bytes = (2 * bt * N * D_in * c_bytes        # X (double-buffered)
                   + 2 * bt * N * kv_tile * 4         # A
                   + 2 * bt * N * Hd * 4              # output
                   + 2 * bt * N * Hd * 4              # xp_s + acc_s scratch
                   + D_in * Hd * c_bytes + Hd * 4 + H * d * d * c_bytes)
    vmem_limit = int(min(max(2 * block_bytes, 32 << 20), 64 << 20))

    kernel = functools.partial(
        _attention_kernel, num_heads=H, head_dim=d, kv_tile=kv_tile,
        compute_dtype=compute_dtype)

    return pl.pallas_call(
        kernel,
        out_shape=jax.ShapeDtypeStruct((B, N, Hd), jnp.float32),
        grid_spec=pltpu.PrefetchScalarGridSpec(
            num_scalar_prefetch=0,
            grid=(B // bt, nk),                        # reduction (kv) axis last
            in_specs=[
                pl.BlockSpec((bt, N, D_in), lambda b, k: (b, 0, 0)),      # X (kv-invariant)
                pl.BlockSpec((bt, N, kv_tile), lambda b, k: (b, 0, k)),   # A columns
                pl.BlockSpec((D_in, Hd), lambda b, k: (0, 0)),            # Wt
                pl.BlockSpec((1, 1, Hd), lambda b, k: (0, 0, 0)),         # bias
                pl.BlockSpec((H, d, d), lambda b, k: (0, 0, 0)),          # C
            ],
            out_specs=pl.BlockSpec((bt, N, Hd), lambda b, k: (b, 0, 0)),  # lane-dense
            scratch_shapes=[
                pltpu.VMEM((bt, N, Hd), jnp.float32),  # xp_s
                pltpu.VMEM((bt, N, Hd), jnp.float32),  # acc_s
            ],
        ),
        compiler_params=pltpu.CompilerParams(
            dimension_semantics=("parallel", "arbitrary"),
            vmem_limit_bytes=vmem_limit),
    )(X.astype(compute_dtype), A.astype(jnp.float32),
      Wt.astype(compute_dtype), bias_f, C.astype(compute_dtype))


def init_params(key, input_dim, output_dim, num_heads):
    """Deterministic xavier-normal init (matches nn.init.xavier_normal_)."""
    d = output_dim // num_heads
    kw, kb, kc = jax.random.split(key, 3)
    std_w = (2.0 / (input_dim + d)) ** 0.5
    std_c = (2.0 / (d + d)) ** 0.5
    W = std_w * jax.random.normal(kw, (num_heads, d, input_dim), jnp.float32)
    C = std_c * jax.random.normal(kc, (num_heads, d, d), jnp.float32)
    # nn.Linear default bias init: U(-1/sqrt(fan_in), 1/sqrt(fan_in))
    bound = 1.0 / (input_dim ** 0.5)
    bias = jax.random.uniform(kb, (num_heads, 1, d), jnp.float32,
                              minval=-bound, maxval=bound)
    return W, bias, C


def reference_forward(X, A, W, bias, C, compute_dtype=jnp.float32):
    """Pure-JAX reference mirroring the PyTorch forward (eval mode).

    With compute_dtype=float32 this is the exact f32 reference; with bfloat16
    it mirrors the kernel's mixed-precision casts (f32 accumulation)."""
    cd = compute_dtype
    f32 = jnp.float32
    heads = []
    H = W.shape[0]
    Xc = X.astype(cd)
    Af = A.astype(f32)
    for i in range(H):
        xp = jnp.einsum('bnk,dk->bnd', Xc, W[i].astype(cd),
                        preferred_element_type=f32) + bias[i].astype(f32)
        xc = jnp.einsum('bnj,ij->bni', xp.astype(cd), C[i].astype(cd),
                        preferred_element_type=f32)
        s = jnp.einsum('bni,bmi->bnm', xc.astype(cd), xp.astype(cd),
                       preferred_element_type=f32)
        m = jnp.tanh(Af * s)
        heads.append(jnp.einsum('bnm,bmd->bnd', m.astype(cd), xp.astype(cd),
                                preferred_element_type=f32))
    return jax.nn.relu(jnp.concatenate(heads, axis=2))


def _make_adjacency(key, batch, n):
    a = (jax.random.uniform(key, (batch, n, n)) > 0.5).astype(jnp.float32)
    a = jnp.maximum(a, a.transpose(0, 2, 1))
    return jnp.maximum(a, jnp.eye(n, dtype=jnp.float32)[None])


if __name__ == "__main__":
    # Small shapes consistent with the module's forward.
    B, N = 2, 8
    input_dim, output_dim, num_heads = 16, 32, 4       # attn_dim d = 8

    key = jax.random.PRNGKey(0)
    kx, ka, kp = jax.random.split(key, 3)

    X = jax.random.normal(kx, (B, N, input_dim), jnp.float32)
    A = _make_adjacency(ka, B, N)
    W, bias, C = init_params(kp, input_dim, output_dim, num_heads)

    ref = reference_forward(X, A, W, bias, C)

    # 1) f32 compute path: tight match against the f32 reference.
    out_f32 = jax.block_until_ready(
        attention_forward(X, A, W, bias, C, compute_dtype=jnp.float32))
    assert out_f32.shape == (B, N, output_dim), out_f32.shape
    assert jnp.allclose(out_f32, ref, atol=1e-4, rtol=1e-4), (
        float(jnp.max(jnp.abs(out_f32 - ref))))

    # 2) bf16 MXU path (default): compare against a cast-matched reference.
    out_bf16 = jax.block_until_ready(attention_forward(X, A, W, bias, C))
    ref_bf16 = reference_forward(X, A, W, bias, C, compute_dtype=jnp.bfloat16)
    assert jnp.allclose(out_bf16, ref_bf16, atol=5e-2, rtol=5e-2), (
        float(jnp.max(jnp.abs(out_bf16 - ref_bf16))))

    # 3) Exercise the kv-tiled reduction path (nk > 1) at N=256, kv_tile=128.
    N2 = 256
    kx2, ka2 = jax.random.split(jax.random.PRNGKey(1), 2)
    X2 = jax.random.normal(kx2, (B, N2, input_dim), jnp.float32)
    A2 = _make_adjacency(ka2, B, N2)
    ref2 = reference_forward(X2, A2, W, bias, C)
    out2 = jax.block_until_ready(
        attention_forward(X2, A2, W, bias, C, compute_dtype=jnp.float32,
                          kv_tile=128))
    rel = jnp.linalg.norm(out2 - ref2) / (jnp.linalg.norm(ref2) + 1e-12)
    assert out2.shape == (B, N2, output_dim), out2.shape
    assert float(rel) < 2e-2, float(rel)

    print("KERNEL_OK")
</pallas_src>

<mosaic_0001>
module attributes {stable_mosaic.version = 11 : i64} {
  func.func @_attention_kernel(%arg0: i32, %arg1: i32, %arg2: memref<2x8x16xf32, #tpu.memory_space<vmem>>, %arg3: memref<2x8x8xf32, #tpu.memory_space<vmem>>, %arg4: memref<16x32xf32, #tpu.memory_space<vmem>>, %arg5: memref<1x1x32xf32, #tpu.memory_space<vmem>>, %arg6: memref<4x8x8xf32, #tpu.memory_space<vmem>>, %arg7: memref<2x8x32xf32, #tpu.memory_space<vmem>>, %arg8: memref<2x8x32xf32, #tpu.memory_space<vmem>>, %arg9: memref<2x8x32xf32, #tpu.memory_space<vmem>>) attributes {dimension_semantics = [#tpu.dimension_semantics<parallel>, #tpu.dimension_semantics<arbitrary>], iteration_bounds = array<i64: 1, 1>, scalar_prefetch = 0 : i64, scratch_operands = 2 : i64, tpu.core_type = #tpu.core_type<tc>, window_params = [{transform_indices = @transform_0, window_bounds = array<i64: 2, 8, 16>}, {transform_indices = @transform_1, window_bounds = array<i64: 2, 8, 8>}, {pipeline_mode = #tpu.pipeline_mode<synchronous>, transform_indices = @transform_2, window_bounds = array<i64: 16, 32>}, {pipeline_mode = #tpu.pipeline_mode<synchronous>, transform_indices = @transform_3, window_bounds = array<i64: 1, 1, 32>}, {pipeline_mode = #tpu.pipeline_mode<synchronous>, transform_indices = @transform_4, window_bounds = array<i64: 4, 8, 8>}, {transform_indices = @transform_5, window_bounds = array<i64: 2, 8, 32>}]} {
    %c0_i32 = arith.constant 0 : i32
    %0 = arith.cmpi eq, %arg1, %c0_i32 : i32
    %1 = arith.extui %0 : i1 to i32
    %c0_i32_0 = arith.constant 0 : i32
    %2 = arith.cmpi ne, %1, %c0_i32_0 : i32
    scf.if %2 {
      %c0_48 = arith.constant 0 : index
      %c0_49 = arith.constant 0 : index
      %c0_50 = arith.constant 0 : index
      %53 = vector.load %arg2[%c0_48, %c0_49, %c0_50] : memref<2x8x16xf32, #tpu.memory_space<vmem>>, vector<2x8x16xf32>
      %c0_51 = arith.constant 0 : index
      %c0_52 = arith.constant 0 : index
      %54 = vector.load %arg4[%c0_51, %c0_52] : memref<16x32xf32, #tpu.memory_space<vmem>>, vector<16x32xf32>
      "tpu.trace_start"() <{level = 10 : i32, message = "bnk,kf->bnf"}> : () -> ()
      %cst_53 = arith.constant dense<0.000000e+00> : vector<2x8x32xf32>
      %55 = tpu.matmul %53, %54, %cst_53 {dimension_numbers = #tpu.dot_dimension_numbers<[2], [0], [0, 1], [1], [0, 0, 0, 1, 1, 1], [], []>} : vector<2x8x16xf32>, vector<16x32xf32>, vector<2x8x32xf32> -> vector<2x8x32xf32>
      "tpu.trace_stop"() : () -> ()
      %c0_54 = arith.constant 0 : index
      %c0_55 = arith.constant 0 : index
      %c0_56 = arith.constant 0 : index
      %56 = vector.load %arg5[%c0_54, %c0_55, %c0_56] : memref<1x1x32xf32, #tpu.memory_space<vmem>>, vector<1x1x32xf32>
      %57 = vector.broadcast %56 : vector<1x1x32xf32> to vector<2x8x32xf32>
      %58 = arith.addf %55, %57 : vector<2x8x32xf32>
      %c0_57 = arith.constant 0 : index
      %c0_58 = arith.constant 0 : index
      %c0_59 = arith.constant 0 : index
      %59 = vector.load %arg8[%c0_57, %c0_58, %c0_59] : memref<2x8x32xf32, #tpu.memory_space<vmem>>, vector<2x8x32xf32>
      tpu.vector_store %arg8[%c0_57, %c0_58, %c0_59], %58 {strides = array<i32>} : memref<2x8x32xf32, #tpu.memory_space<vmem>>, vector<2x8x32xf32>,
      %cst_60 = arith.constant 0.000000e+00 : f32
      %60 = vector.broadcast %cst_60 : f32 to vector<2x8x32xf32>
      %c0_61 = arith.constant 0 : index
      %c0_62 = arith.constant 0 : index
      %c0_63 = arith.constant 0 : index
      %61 = vector.load %arg9[%c0_61, %c0_62, %c0_63] : memref<2x8x32xf32, #tpu.memory_space<vmem>>, vector<2x8x32xf32>
      tpu.vector_store %arg9[%c0_61, %c0_62, %c0_63], %60 {strides = array<i32>} : memref<2x8x32xf32, #tpu.memory_space<vmem>>, vector<2x8x32xf32>,
    } else {
    }
    %c0 = arith.constant 0 : index
    %c0_1 = arith.constant 0 : index
    %c0_2 = arith.constant 0 : index
    %3 = vector.load %arg3[%c0, %c0_1, %c0_2] : memref<2x8x8xf32, #tpu.memory_space<vmem>>, vector<2x8x8xf32>
    %c8_i32 = arith.constant 8 : i32
    %4 = arith.muli %arg1, %c8_i32 : i32
    %5 = tpu.assume_multiple %4, 8 : i32
    %c0_3 = arith.constant 0 : index
    %c0_4 = arith.constant 0 : index
    %c0_5 = arith.constant 0 : index
    %6 = vector.load %arg8[%c0_3, %c0_4, %c0_5] : memref<2x8x32xf32, #tpu.memory_space<vmem>>, vector<2x8x8xf32>
    %c0_6 = arith.constant 0 : index
    %7 = arith.index_cast %5 : i32 to index
    %c0_7 = arith.constant 0 : index
    %8 = vector.load %arg8[%c0_6, %7, %c0_7] : memref<2x8x32xf32, #tpu.memory_space<vmem>>, vector<2x8x8xf32>
    %c0_8 = arith.constant 0 : index
    %c0_9 = arith.constant 0 : index
    %c0_10 = arith.constant 0 : index
    %9 = vector.load %arg6[%c0_8, %c0_9, %c0_10] : memref<4x8x8xf32, #tpu.memory_space<vmem>>, vector<1x8x8xf32>
    %10 = vector.shape_cast %9 : vector<1x8x8xf32> to vector<8x8xf32>
    "tpu.trace_start"() <{level = 10 : i32, message = "bnj,ij->bni"}> : () -> ()
    %cst = arith.constant dense<0.000000e+00> : vector<2x8x8xf32>
    %11 = tpu.matmul %6, %10, %cst {dimension_numbers = #tpu.dot_dimension_numbers<[2], [1], [0, 1], [0], [0, 0, 0, 1, 1, 0], [], []>} : vector<2x8x8xf32>, vector<8x8xf32>, vector<2x8x8xf32> -> vector<2x8x8xf32>
    "tpu.trace_stop"() : () -> ()
    "tpu.trace_start"() <{level = 10 : i32, message = "bni,bmi->bnm"}> : () -> ()
    %cst_11 = arith.constant dense<0.000000e+00> : vector<2x8x8xf32>
    %12 = tpu.matmul %11, %8, %cst_11 {dimension_numbers = #tpu.dot_dimension_numbers<[2], [2], [1], [1], [0, 0, 0, 1, 1, 1], [0], [0]>} : vector<2x8x8xf32>, vector<2x8x8xf32>, vector<2x8x8xf32> -> vector<2x8x8xf32>
    "tpu.trace_stop"() : () -> ()
    %13 = arith.mulf %3, %12 : vector<2x8x8xf32>
    %14 = math.tanh %13 : vector<2x8x8xf32>
    "tpu.trace_start"() <{level = 10 : i32, message = "bnm,bmd->bnd"}> : () -> ()
    %cst_12 = arith.constant dense<0.000000e+00> : vector<2x8x8xf32>
    %15 = tpu.matmul %14, %8, %cst_12 {dimension_numbers = #tpu.dot_dimension_numbers<[2], [1], [1], [2], [0, 0, 0, 1, 1, 2], [0], [0]>} : vector<2x8x8xf32>, vector<2x8x8xf32>, vector<2x8x8xf32> -> vector<2x8x8xf32>
    "tpu.trace_stop"() : () -> ()
    %c0_13 = arith.constant 0 : index
    %c0_14 = arith.constant 0 : index
    %c8 = arith.constant 8 : index
    %16 = vector.load %arg8[%c0_13, %c0_14, %c8] : memref<2x8x32xf32, #tpu.memory_space<vmem>>, vector<2x8x8xf32>
    %c0_15 = arith.constant 0 : index
    %17 = arith.index_cast %5 : i32 to index
    %c8_16 = arith.constant 8 : index
    %18 = vector.load %arg8[%c0_15, %17, %c8_16] : memref<2x8x32xf32, #tpu.memory_space<vmem>>, vector<2x8x8xf32>
    %c1 = arith.constant 1 : index
    %c0_17 = arith.constant 0 : index
    %c0_18 = arith.constant 0 : index
    %19 = vector.load %arg6[%c1, %c0_17, %c0_18] : memref<4x8x8xf32, #tpu.memory_space<vmem>>, vector<1x8x8xf32>
    %20 = vector.shape_cast %19 : vector<1x8x8xf32> to vector<8x8xf32>
    "tpu.trace_start"() <{level = 10 : i32, message = "bnj,ij->bni"}> : () -> ()
    %cst_19 = arith.constant dense<0.000000e+00> : vector<2x8x8xf32>
    %21 = tpu.matmul %16, %20, %cst_19 {dimension_numbers = #tpu.dot_dimension_numbers<[2], [1], [0, 1], [0], [0, 0, 0, 1, 1, 0], [], []>} : vector<2x8x8xf32>, vector<8x8xf32>, vector<2x8x8xf32> -> vector<2x8x8xf32>
    "tpu.trace_stop"() : () -> ()
    "tpu.trace_start"() <{level = 10 : i32, message = "bni,bmi->bnm"}> : () -> ()
    %cst_20 = arith.constant dense<0.000000e+00> : vector<2x8x8xf32>
    %22 = tpu.matmul %21, %18, %cst_20 {dimension_numbers = #tpu.dot_dimension_numbers<[2], [2], [1], [1], [0, 0, 0, 1, 1, 1], [0], [0]>} : vector<2x8x8xf32>, vector<2x8x8xf32>, vector<2x8x8xf32> -> vector<2x8x8xf32>
    "tpu.trace_stop"() : () -> ()
    %23 = arith.mulf %3, %22 : vector<2x8x8xf32>
    %24 = math.tanh %23 : vector<2x8x8xf32>
    "tpu.trace_start"() <{level = 10 : i32, message = "bnm,bmd->bnd"}> : () -> ()
    %cst_21 = arith.constant dense<0.000000e+00> : vector<2x8x8xf32>
    %25 = tpu.matmul %24, %18, %cst_21 {dimension_numbers = #tpu.dot_dimension_numbers<[2], [1], [1], [2], [0, 0, 0, 1, 1, 2], [0], [0]>} : vector<2x8x8xf32>, vector<2x8x8xf32>, vector<2x8x8xf32> -> vector<2x8x8xf32>
    "tpu.trace_stop"() : () -> ()
    %c0_22 = arith.constant 0 : index
    %c0_23 = arith.constant 0 : index
    %c16 = arith.constant 16 : index
    %26 = vector.load %arg8[%c0_22, %c0_23, %c16] : memref<2x8x32xf32, #tpu.memory_space<vmem>>, vector<2x8x8xf32>
    %c0_24 = arith.constant 0 : index
    %27 = arith.index_cast %5 : i32 to index
    %c16_25 = arith.constant 16 : index
    %28 = vector.load %arg8[%c0_24, %27, %c16_25] : memref<2x8x32xf32, #tpu.memory_space<vmem>>, vector<2x8x8xf32>
    %c2 = arith.constant 2 : index
    %c0_26 = arith.constant 0 : index
    %c0_27 = arith.constant 0 : index
    %29 = vector.load %arg6[%c2, %c0_26, %c0_27] : memref<4x8x8xf32, #tpu.memory_space<vmem>>, vector<1x8x8xf32>
    %30 = vector.shape_cast %29 : vector<1x8x8xf32> to vector<8x8xf32>
    "tpu.trace_start"() <{level = 10 : i32, message = "bnj,ij->bni"}> : () -> ()
    %cst_28 = arith.constant dense<0.000000e+00> : vector<2x8x8xf32>
    %31 = tpu.matmul %26, %30, %cst_28 {dimension_numbers = #tpu.dot_dimension_numbers<[2], [1], [0, 1], [0], [0, 0, 0, 1, 1, 0], [], []>} : vector<2x8x8xf32>, vector<8x8xf32>, vector<2x8x8xf32> -> vector<2x8x8xf32>
    "tpu.trace_stop"() : () -> ()
    "tpu.trace_start"() <{level = 10 : i32, message = "bni,bmi->bnm"}> : () -> ()
    %cst_29 = arith.constant dense<0.000000e+00> : vector<2x8x8xf32>
    %32 = tpu.matmul %31, %28, %cst_29 {dimension_numbers = #tpu.dot_dimension_numbers<[2], [2], [1], [1], [0, 0, 0, 1, 1, 1], [0], [0]>} : vector<2x8x8xf32>, vector<2x8x8xf32>, vector<2x8x8xf32> -> vector<2x8x8xf32>
    "tpu.trace_stop"() : () -> ()
    %33 = arith.mulf %3, %32 : vector<2x8x8xf32>
    %34 = math.tanh %33 : vector<2x8x8xf32>
    "tpu.trace_start"() <{level = 10 : i32, message = "bnm,bmd->bnd"}> : () -> ()
    %cst_30 = arith.constant dense<0.000000e+00> : vector<2x8x8xf32>
    %35 = tpu.matmul %34, %28, %cst_30 {dimension_numbers = #tpu.dot_dimension_numbers<[2], [1], [1], [2], [0, 0, 0, 1, 1, 2], [0], [0]>} : vector<2x8x8xf32>, vector<2x8x8xf32>, vector<2x8x8xf32> -> vector<2x8x8xf32>
    "tpu.trace_stop"() : () -> ()
    %c0_31 = arith.constant 0 : index
    %c0_32 = arith.constant 0 : index
    %c24 = arith.constant 24 : index
    %36 = vector.load %arg8[%c0_31, %c0_32, %c24] : memref<2x8x32xf32, #tpu.memory_space<vmem>>, vector<2x8x8xf32>
    %c0_33 = arith.constant 0 : index
    %37 = arith.index_cast %5 : i32 to index
    %c24_34 = arith.constant 24 : index
    %38 = vector.load %arg8[%c0_33, %37, %c24_34] : memref<2x8x32xf32, #tpu.memory_space<vmem>>, vector<2x8x8xf32>
    %c3 = arith.constant 3 : index
    %c0_35 = arith.constant 0 : index
    %c0_36 = arith.constant 0 : index
    %39 = vector.load %arg6[%c3, %c0_35, %c0_36] : memref<4x8x8xf32, #tpu.memory_space<vmem>>, vector<1x8x8xf32>
    %40 = vector.shape_cast %39 : vector<1x8x8xf32> to vector<8x8xf32>
    "tpu.trace_start"() <{level = 10 : i32, message = "bnj,ij->bni"}> : () -> ()
    %cst_37 = arith.constant dense<0.000000e+00> : vector<2x8x8xf32>
    %41 = tpu.matmul %36, %40, %cst_37 {dimension_numbers = #tpu.dot_dimension_numbers<[2], [1], [0, 1], [0], [0, 0, 0, 1, 1, 0], [], []>} : vector<2x8x8xf32>, vector<8x8xf32>, vector<2x8x8xf32> -> vector<2x8x8xf32>
    "tpu.trace_stop"() : () -> ()
    "tpu.trace_start"() <{level = 10 : i32, message = "bni,bmi->bnm"}> : () -> ()
    %cst_38 = arith.constant dense<0.000000e+00> : vector<2x8x8xf32>
    %42 = tpu.matmul %41, %38, %cst_38 {dimension_numbers = #tpu.dot_dimension_numbers<[2], [2], [1], [1], [0, 0, 0, 1, 1, 1], [0], [0]>} : vector<2x8x8xf32>, vector<2x8x8xf32>, vector<2x8x8xf32> -> vector<2x8x8xf32>
    "tpu.trace_stop"() : () -> ()
    %43 = arith.mulf %3, %42 : vector<2x8x8xf32>
    %44 = math.tanh %43 : vector<2x8x8xf32>
    "tpu.trace_start"() <{level = 10 : i32, message = "bnm,bmd->bnd"}> : () -> ()
    %cst_39 = arith.constant dense<0.000000e+00> : vector<2x8x8xf32>
    %45 = tpu.matmul %44, %38, %cst_39 {dimension_numbers = #tpu.dot_dimension_numbers<[2], [1], [1], [2], [0, 0, 0, 1, 1, 2], [0], [0]>} : vector<2x8x8xf32>, vector<2x8x8xf32>, vector<2x8x8xf32> -> vector<2x8x8xf32>
    "tpu.trace_stop"() : () -> ()
    %c0_40 = arith.constant 0 : index
    %c0_41 = arith.constant 0 : index
    %c0_42 = arith.constant 0 : index
    %46 = vector.load %arg9[%c0_40, %c0_41, %c0_42] : memref<2x8x32xf32, #tpu.memory_space<vmem>>, vector<2x8x32xf32>
    %47 = tpu.concatenate %15, %25, %35, %45 in 2 : vector<2x8x8xf32>, vector<2x8x8xf32>, vector<2x8x8xf32>, vector<2x8x8xf32> -> vector<2x8x32xf32>
    %48 = arith.addf %46, %47 : vector<2x8x32xf32>
    %c0_43 = arith.constant 0 : index
    %c0_44 = arith.constant 0 : index
    %c0_45 = arith.constant 0 : index
    %49 = vector.load %arg9[%c0_43, %c0_44, %c0_45] : memref<2x8x32xf32, #tpu.memory_space<vmem>>, vector<2x8x32xf32>
    tpu.vector_store %arg9[%c0_43, %c0_44, %c0_45], %48 {strides = array<i32>} : memref<2x8x32xf32, #tpu.memory_space<vmem>>, vector<2x8x32xf32>,
    %c0_i32_46 = arith.constant 0 : i32
    %50 = arith.cmpi eq, %arg1, %c0_i32_46 : i32
    %51 = arith.extui %50 : i1 to i32
    %c0_i32_47 = arith.constant 0 : i32
    %52 = arith.cmpi ne, %51, %c0_i32_47 : i32
    scf.if %52 {
      %c0_48 = arith.constant 0 : index
      %c0_49 = arith.constant 0 : index
      %c0_50 = arith.constant 0 : index
      %53 = vector.load %arg9[%c0_48, %c0_49, %c0_50] : memref<2x8x32xf32, #tpu.memory_space<vmem>>, vector<2x8x32xf32>
      %cst_51 = arith.constant 0.000000e+00 : f32
      %54 = vector.broadcast %cst_51 : f32 to vector<2x8x32xf32>
      %55 = arith.maximumf %53, %54 : vector<2x8x32xf32>
      %c0_52 = arith.constant 0 : index
      %c0_53 = arith.constant 0 : index
      %c0_54 = arith.constant 0 : index
      %56 = vector.load %arg7[%c0_52, %c0_53, %c0_54] : memref<2x8x32xf32, #tpu.memory_space<vmem>>, vector<2x8x32xf32>
      tpu.vector_store %arg7[%c0_52, %c0_53, %c0_54], %55 {strides = array<i32>} : memref<2x8x32xf32, #tpu.memory_space<vmem>>, vector<2x8x32xf32>,
    } else {
    }
    return
  }
  func.func @transform_0(%arg0: i32, %arg1: i32) -> (i32, i32, i32) {
    %c0_i32 = arith.constant 0 : i32
    %c0_i32_0 = arith.constant 0 : i32
    %c0_i32_1 = arith.constant 0 : i32
    return %arg0, %c0_i32, %c0_i32_0 : i32, i32, i32
  }
  func.func @transform_1(%arg0: i32, %arg1: i32) -> (i32, i32, i32) {
    %c0_i32 = arith.constant 0 : i32
    %c0_i32_0 = arith.constant 0 : i32
    return %arg0, %c0_i32, %arg1 : i32, i32, i32
  }
  func.func @transform_2(%arg0: i32, %arg1: i32) -> (i32, i32) {
    %c0_i32 = arith.constant 0 : i32
    %c0_i32_0 = arith.constant 0 : i32
    %c0_i32_1 = arith.constant 0 : i32
    return %c0_i32, %c0_i32_0 : i32, i32
  }
  func.func @transform_3(%arg0: i32, %arg1: i32) -> (i32, i32, i32) {
    %c0_i32 = arith.constant 0 : i32
    %c0_i32_0 = arith.constant 0 : i32
    %c0_i32_1 = arith.constant 0 : i32
    %c0_i32_2 = arith.constant 0 : i32
    return %c0_i32, %c0_i32_0, %c0_i32_1 : i32, i32, i32
  }
  func.func @transform_4(%arg0: i32, %arg1: i32) -> (i32, i32, i32) {
    %c0_i32 = arith.constant 0 : i32
    %c0_i32_0 = arith.constant 0 : i32
    %c0_i32_1 = arith.constant 0 : i32
    %c0_i32_2 = arith.constant 0 : i32
    return %c0_i32, %c0_i32_0, %c0_i32_1 : i32, i32, i32
  }
  func.func @transform_5(%arg0: i32, %arg1: i32) -> (i32, i32, i32) {
    %c0_i32 = arith.constant 0 : i32
    %c0_i32_0 = arith.constant 0 : i32
    %c0_i32_1 = arith.constant 0 : i32
    return %arg0, %c0_i32, %c0_i32_0 : i32, i32, i32
  }
}

</mosaic_0001>

<bundles_post_ra>
// kernel: tpu_custom_call.1
= control target key start
LH: loop header
LB: loop body
LE: loop exit
PB: predicated region body
PF: predicated region fallthrough
CT: control target
= control target key end

     0   :  { %10 = vsyncpa [#allocation5], 0  ;;  %s2380_s0 = inlined_call_operand.hbm [shape: f32[2,8,16], index: 0, kind: input, shape index: {}]   ;;  %s2381_s1 = inlined_call_operand.hbm [shape: f32[2,8,8], index: 1, kind: input, shape index: {}]   ;;  %s2382_s2 = inlined_call_operand.hbm [shape: f32[16,32], index: 2, kind: input, shape index: {}]   ;;  %s2383_s3 = inlined_call_operand.vmem [shape: f32[1,1,32], index: 3, kind: input, shape index: {}]   ;;  %s2384_s4 = inlined_call_operand.hbm [shape: f32[4,8,8], index: 4, kind: input, shape index: {}]   ;;  %s2385_s5 = inlined_call_operand.hbm [shape: f32[2,8,32], index: 5, kind: output, shape index: {}]  }
   0x1   :  { %11 = vsyncpa [#allocation8], 0 }
   0x2   :  { %12 = vsyncpa [#allocation11], 0 }
   0x3   :  { %13 = vsyncpa [#allocation6], 0  ;;  %s2179_s18 = smov [#allocation7]   ;;  %s2180_s20 = smov [#allocation4]  }
   0x4   :  { %s31_s19 = sshll.u32 %s2179_s18, 4  ;;  %s19_s21 = sshll.u32 %s2180_s20, 4  ;;  %s32_s19 = int_to_ptr.vmem [resolvable:$true] %s31_s19  ;;  %s20_s21 = int_to_ptr.vmem [resolvable:$true] %s19_s21 }
   0x5   :  { %s2079_s22 = scalar_lea.vmem %s32_s19, 256  ;;  %p2084_p1 = scmp.lt.s32.totalorder %s32_s19, %s32_s19 }
   0x6   :  { %p2080_p0 = scmp.ne.s32.totalorder %s32_s19, %s2079_s22  ;;  %p2085_p2 = scmp.lt.s32.totalorder %s2079_s22, %s2079_s22 }
   0x8   :  { %p2086_p3 = por %p2085_p2, %p2084_p1 }
   0xa   :  { %p2087_p4 = pnand %p2086_p3, %p2080_p0 }
   0xc   :  { %2090 = shalt.err (!%p2087_p4)
}
   0xd   :  { %s2181_s23 = smov 128   ;;  %s2182_s24 = smov 8  }
   0xe   :  { %37 = dma.hbm_to_vmem [thread:$0]  %s2381_s1, 256, %s32_s19, [#allocation8], %s2181_s23, %s2181_s23, %s2182_s24  }
   0xf   :  { %s2099_s27 = scalar_lea.vmem %s20_s21, 256  ;;  %p2104_p6 = scmp.lt.s32.totalorder %s20_s21, %s20_s21 }
  0x10   :  { %p2100_p5 = scmp.ne.s32.totalorder %s20_s21, %s2099_s27  ;;  %p2105_p7 = scmp.lt.s32.totalorder %s2099_s27, %s2099_s27 }
  0x12   :  { %p2106_p8 = por %p2105_p7, %p2104_p6 }
  0x14   :  { %p2107_p9 = pnand %p2106_p8, %p2100_p5 }
  0x16   :  { %2110 = shalt.err (!%p2107_p9)
}
  0x17   :  { %25 = dma.hbm_to_vmem [thread:$0]  %s2380_s0, 256, %s20_s21, [#allocation5], %s2181_s23, %s2181_s23, %s2182_s24  }
  0x18   :  { %s2183_s30 = smov [#allocation9]   ;;  %s2184_s7 = smov [#allocation10]  }
  0x19   :  { %s43_s6 = sshll.u32 %s2183_s30, 4  ;;  %s57_s8 = sshll.u32 %s2184_s7, 4  ;;  %s44_s6 = int_to_ptr.vmem [resolvable:$true] %s43_s6  ;;  %s58_s8 = int_to_ptr.vmem [resolvable:$true] %s57_s8 }
  0x1a   :  { %s2119_s1 = scalar_lea.vmem %s44_s6, 256  ;;  %p2124_p11 = scmp.lt.s32.totalorder %s44_s6, %s44_s6 }
  0x1b   :  { %p2120_p10 = scmp.ne.s32.totalorder %s44_s6, %s2119_s1  ;;  %p2125_p12 = scmp.lt.s32.totalorder %s2119_s1, %s2119_s1 }
  0x1d   :  { %p2126_p13 = por %p2125_p12, %p2124_p11 }
  0x1f   :  { %p2127_p0 = pnand %p2126_p13, %p2120_p10 }
  0x21   :  { %2130 = shalt.err (!%p2127_p0)
}
  0x22   :  { %49 = dma.hbm_to_vmem [thread:$0]  %s2382_s2, 256, %s44_s6, [#allocation8], %s2181_s23, %s2181_s23, %s2182_s24  }
  0x23   :  { %s2139_s0 = scalar_lea.vmem %s58_s8, 512  ;;  %p2144_p2 = scmp.lt.s32.totalorder %s58_s8, %s58_s8 }
  0x24   :  { %p2140_p1 = scmp.ne.s32.totalorder %s58_s8, %s2139_s0  ;;  %p2145_p3 = scmp.lt.s32.totalorder %s2139_s0, %s2139_s0 }
  0x26   :  { %p2146_p4 = por %p2145_p3, %p2144_p2 }
  0x28   :  { %p2147_p5 = pnand %p2146_p4, %p2140_p1 }
  0x2a   :  { %2150 = shalt.err (!%p2147_p5)
}
  0x2b   :  { %63 = dma.hbm_to_vmem [thread:$0]  %s2384_s4, 512, %s58_s8, [#allocation11], %s2181_s23, %s2181_s23, %s2182_s24  }
  0x2c   :  { %2171 = dma.done.wait [#allocation5], 256  }
  0x2d   :  { %2172 = vsyncadd [#allocation5], 4294967040 }
  0x2e   :  { %2173 = dma.done.wait [#allocation8], 512  }
  0x2f   :  { %2174 = vsyncadd [#allocation8], 4294966784 }
  0x30   :  { %2175 = dma.done.wait [#allocation11], 512  }
  0x31   :  { %2176 = vsyncadd [#allocation11], 4294966784  ;;  %vm91_vm0 = vcmask 130048   ;;  %v83_v0 = vld [vmem:[#allocation9 + $0x8] sm:$0xff]  ;;  %v82_v1 = vld [vmem:[#allocation9] sm:$0xff]  ;;  %vm173_vm1 = vcmask 261120  }
  0x32   :  { %v80_v2 = vld [vmem:[#allocation4] sm:$0xff]  ;;  %1934 = vmatprep.subr.mxu0 %v83_v0  ;;  %v81_v3 = vld [vmem:[#allocation4 + $0x8] sm:$0xff]  ;;  %v186_v4 = vld [vmem:[#allocation10] sm:$0xff]  ;;  %vm187_vm2 = vcmask 64512   ;;  %v2185_v5 = vmov 0.0   ;;  %s2186_s13 = smov 120  }
  0x33   :  { %1938 = vmatprep.mubr.msk.f32.mxu0 %vm91_vm0, %v80_v2  ;;  %1935 = vmatpush3.msra.mxu0 %v83_v0  ;;  %176 = vst.msk [vmem:[#allocation3] sm:$0xff] %vm173_vm1, %v2185_v5  ;;  %177 = vst.msk [vmem:[#allocation3 + $0x8] sm:$0xff] %vm173_vm1, %v2185_v5  ;;  %v1847_v6 = vld [vmem:[%s2383_s3] ss:$0 sm:$0xff]  ;;  %s2187_s3 = smov 112   ;;  %s2188_s14 = smov 104  }
  0x34   :  { %1936 = vmatprep.subr.mxu0 %v82_v1  ;;  %1941 = vmatprep.subr.msk.mxu1 %vm187_vm2, %v186_v4  ;;  %vm2189_vm3 = vmmov 0   ;;  %v579_v15 = vld [vmem:[#allocation10 + $0x8] sm:$0xff]  ;;  %v2282_v18 = vld [vmem:[#allocation7] sm:$0xff]  ;;  %v981_v36 = vld [vmem:[#allocation10 + $0x10] sm:$0xff]  ;;  %s2190_s15 = smov 16   ;;  %s2191_s16 = smov 24  }
  0x35   :  { %1937 = vmatpush3.msra.mxu0 %v82_v1  ;;  %1942 = vmatpush3.xpose.msk.msra.mxu1 %vm187_vm2, %v186_v4  ;;  %v2280_v16 = vld [vmem:[#allocation7 + $0x8] sm:$0xff]  ;;  %v1383_v55 = vld [vmem:[#allocation10 + $0x18] sm:$0xff]  ;;  %vm1811_vm4 = vcmask 195584   ;;  %s2192_s17 = smov [#allocation12]  }
  0x36   :  { %1939 = vmatmul.mubr.msk.f32.vlgmr.msra.gmra.mxu0 %vm91_vm0, %v81_v3  ;;  %1946 = vmatprep.subr.mxu0 %v2185_v5  ;;  %s1833_s18 = sshll.u32 %s2192_s17, 4  ;;  %s1834_s18 = int_to_ptr.vmem [resolvable:$true] %s1833_s18 }
  0x37   :  { %1951 = vmatprep.subr.mxu1 %v2185_v5  ;;  %1948 = vmatprep.mubr.msk.f32.mxu0 %vm2189_vm3, %v2185_v5  ;;  %s2151_s19 = scalar_lea.vmem %s1834_s18, 256  ;;  %p2156_p7 = scmp.lt.s32.totalorder %s1834_s18, %s1834_s18 }
  0x38   :  { %p2152_p6 = scmp.ne.s32.totalorder %s1834_s18, %s2151_s19  ;;  %p2157_p8 = scmp.lt.s32.totalorder %s2151_s19, %s2151_s19 }
  0x3a   :  { %p2158_p9 = por %p2157_p8, %p2156_p7 }
  0x3c   :  { %p2159_p10 = pnand %p2158_p9, %p2152_p6 }
  0xf6   :  { %v1940_v7 = vpop.f32.mrf.mxu0 }
  0xf7   :  { %v170_v8 = vadd.f32 %v1940_v7, %v1847_v6 }
  0xf8   :  { %v164_v9 = vpop.f32.mrf.mxu0 }
  0xf9   :  { %175 = vst.msk [vmem:[#allocation2 + $0x8] sm:$0xff] %vm173_vm1, %v170_v8  ;;  %v165_v10 = vadd.f32 %v1847_v6, %v164_v9 }
  0xfb   :  { %174 = vst.msk [vmem:[#allocation2] sm:$0xff] %vm173_vm1, %v165_v10 }
 0x100   :  { %v182_v12 = vld [vmem:[#allocation2 + $0x8] sm:$0xff] }
 0x102   :  { %v576_v11 = vld [vmem:[#allocation2] sm:$0xff] }
 0x103   :  { %669 = vrot.lane.b32.xlu1 %v576_v11, %s2186_s13  ;;  %582 = vrot.lane.b32.xlu0 %v576_v11, %s2186_s13 }
 0x104   :  { %1943 = vmatprep.mubr.msk.f32.mxu1 %vm187_vm2, %v576_v11  ;;  %1947 = vmatpush3.xpose.msk.msra.mxu0 %vm187_vm2, %v576_v11 }
 0x105   :  { %1944 = vmatmul.mubr.msk.f32.vlgmr.msra.gmra.mxu1 %vm187_vm2, %v182_v12  ;;  %1956 = vmatprep.subr.mxu0 %v2185_v5 }
 0x106   :  { %1952 = vmatpush3.xpose.msk.msra.mxu1 %vm187_vm2, %v182_v12  ;;  %1953 = vmatprep.mubr.msk.f32.mxu1 %vm2189_vm3, %v2185_v5 }
 0x107   :  { %747 = vrot.lane.b32.xlu1 %v182_v12, %s2186_s13  ;;  %584 = vrot.lane.b32.xlu0 %v182_v12, %s2186_s13 }
 0x108   :  { %1961 = vmatprep.subr.mxu1 %v2185_v5 }
 0x10b   :  { %986 = vrot.lane.b32.xlu1 %v182_v12, %s2187_s3  ;;  %984 = vrot.lane.b32.xlu0 %v576_v11, %s2187_s3 }
 0x10f   :  { %1149 = vrot.lane.b32.xlu1 %v182_v12, %s2187_s3  ;;  %1071 = vrot.lane.b32.xlu0 %v576_v11, %s2187_s3 }
 0x113   :  { %1388 = vrot.lane.b32.xlu1 %v182_v12, %s2188_s14  ;;  %1386 = vrot.lane.b32.xlu0 %v576_v11, %s2188_s14 }
 0x117   :  { %1551 = vrot.lane.b32.xlu1 %v182_v12, %s2188_s14  ;;  %1473 = vrot.lane.b32.xlu0 %v576_v11, %s2188_s14 }
 0x175   :  { %v583_v25 = vpop.permute.xlu0 %582  ;;  %v670_v26 = vpop.permute.xlu1 %669 }
 0x179   :  { %v585_v28 = vpop.permute.xlu0 %584  ;;  %v748_v29 = vpop.permute.xlu1 %747 }
 0x17d   :  { %v985_v43 = vpop.permute.xlu0 %984  ;;  %v987_v45 = vpop.permute.xlu1 %986 }
 0x181   :  { %v1072_v46 = vpop.permute.xlu0 %1071  ;;  %v1150_v48 = vpop.permute.xlu1 %1149 }
 0x185   :  { %v1387_v62 = vpop.permute.xlu0 %1386  ;;  %v1389_v0 = vpop.permute.xlu1 %1388 }
 0x189   :  { %v1474_v1 = vpop.permute.xlu0 %1473  ;;  %v1552_v3 = vpop.permute.xlu1 %1551 }
 0x1c5   :  { %v1945_v13 = vpop.f32.mrf.mxu1 }
 0x1c6   :  { %1954 = vmatmul.mubr.msk.f32.vlgmr.msra.gmra.mxu1 %vm187_vm2, %v1945_v13 }
 0x1c7   :  { %1962 = vmatpush3.msra.mxu1 %v182_v12  ;;  %v263_v14 = vpop.f32.mrf.mxu1  ;;  %1963 = vmatprep.mubr.msk.f32.mxu1 %vm2189_vm3, %v2185_v5 }
 0x1c8   :  { %1949 = vmatmul.mubr.msk.f32.vlgmr.msra.gmra.mxu0 %vm187_vm2, %v263_v14  ;;  %1971 = vmatprep.subr.mxu1 %v2185_v5 }
 0x1c9   :  { %1957 = vmatpush3.msra.mxu0 %v576_v11  ;;  %1958 = vmatprep.mubr.msk.f32.mxu0 %vm2189_vm3, %v2185_v5 }
 0x1ca   :  { %1966 = vmatprep.subr.msk.mxu0 %vm187_vm2, %v579_v15 }
 0x286   :  { %v420_v17 = vpop.f32.mrf.mxu1 }
 0x287   :  { %v425_v19 = vmul.f32 %v420_v17, %v2280_v16 }
 0x288   :  { %v344_v20 = vpop.f32.mrf.mxu0  ;;  %v1955_v21 = vpop.f32.mrf.mxu1 }
 0x289   :  { %2055 = vtanh.f32 %v425_v19  ;;  %v424_v22 = vmul.f32 %v344_v20, %v2282_v18 }
 0x28a   :  { %v1950_v23 = vpop.f32.mrf.mxu0 }
 0x28b   :  { %2057 = vtanh.f32 %v424_v22 }
 0x296   :  { %v2056_v24 = vpop.eup %2055 }
 0x297   :  { %1964 = vmatmul.mubr.msk.f32.vlgmr.msra.gmra.mxu1 %vm187_vm2, %v2056_v24 }
 0x298   :  { %v2058_v27 = vpop.eup %2057  ;;  %1972 = vmatpush3.xpose.msk.msra.mxu1 %vm187_vm2, %v670_v26  ;;  %1973 = vmatprep.mubr.msk.f32.mxu1 %vm2189_vm3, %v2185_v5 }
 0x299   :  { %1959 = vmatmul.mubr.msk.f32.vlgmr.msra.gmra.mxu0 %vm187_vm2, %v2058_v27  ;;  %1981 = vmatprep.subr.mxu1 %v2185_v5  ;;  %v1781_v27 = vld [vmem:[#allocation3 + $0x8] sm:$0xff] }
 0x29a   :  { %1967 = vmatpush3.xpose.msk.msra.mxu0 %vm187_vm2, %v579_v15  ;;  %1968 = vmatprep.mubr.msk.f32.mxu0 %vm187_vm2, %v583_v25 }
 0x29b   :  { %1976 = vmatprep.subr.mxu0 %v2185_v5 }
 0x29d   :  { %1969 = vmatmul.mubr.msk.f32.vlgmr.msra.gmra.mxu0 %vm187_vm2, %v585_v28 }
 0x29e   :  { %1977 = vmatpush3.xpose.msk.msra.mxu0 %vm187_vm2, %v748_v29  ;;  %1978 = vmatprep.mubr.msk.f32.mxu0 %vm2189_vm3, %v2185_v5 }
 0x29f   :  { %1986 = vmatprep.subr.mxu0 %v2185_v5 }
 0x357   :  { %v2300_v30 = vpop.f32.mrf.mxu1 }
 0x359   :  { %v2302_v31 = vpop.f32.mrf.mxu0  ;;  %v1965_v32 = vpop.f32.mrf.mxu1 }
 0x35b   :  { %v1960_v33 = vpop.f32.mrf.mxu0 }
 0x35d   :  { %v1970_v34 = vpop.f32.mrf.mxu0 }
 0x35e   :  { %1979 = vmatmul.mubr.msk.f32.vlgmr.msra.gmra.mxu0 %vm187_vm2, %v1970_v34  ;;  %v1780_v34 = vld [vmem:[#allocation3] sm:$0xff] }
 0x35f   :  { %1987 = vmatpush3.msra.mxu0 %v748_v29  ;;  %v659_v35 = vpop.f32.mrf.mxu0  ;;  %1988 = vmatprep.mubr.msk.f32.mxu0 %vm2189_vm3, %v2185_v5 }
 0x360   :  { %1974 = vmatmul.mubr.msk.f32.vlgmr.msra.gmra.mxu1 %vm187_vm2, %v659_v35  ;;  %1996 = vmatprep.subr.mxu0 %v2185_v5 }
 0x361   :  { %1982 = vmatpush3.msra.mxu1 %v670_v26  ;;  %1983 = vmatprep.mubr.msk.f32.mxu1 %vm2189_vm3, %v2185_v5 }
 0x362   :  { %1991 = vmatprep.subr.msk.mxu1 %vm187_vm2, %v981_v36 }
 0x41e   :  { %v820_v37 = vpop.f32.mrf.mxu0 }
 0x41f   :  { %v825_v38 = vmul.f32 %v820_v37, %v2280_v16 }
 0x420   :  { %v742_v39 = vpop.f32.mrf.mxu1  ;;  %v1980_v40 = vpop.f32.mrf.mxu0 }
 0x421   :  { %2059 = vtanh.f32 %v825_v38  ;;  %v824_v41 = vmul.f32 %v742_v39, %v2282_v18 }
 0x422   :  { %v1975_v42 = vpop.f32.mrf.mxu1 }
 0x423   :  { %2061 = vtanh.f32 %v824_v41 }
 0x42e   :  { %v2060_v44 = vpop.eup %2059 }
 0x42f   :  { %1989 = vmatmul.mubr.msk.f32.vlgmr.msra.gmra.mxu0 %vm187_vm2, %v2060_v44 }
 0x430   :  { %v2062_v47 = vpop.eup %2061  ;;  %1997 = vmatpush3.xpose.msk.msra.mxu0 %vm187_vm2, %v1072_v46  ;;  %1998 = vmatprep.mubr.msk.f32.mxu0 %vm2189_vm3, %v2185_v5 }
 0x431   :  { %1984 = vmatmul.mubr.msk.f32.vlgmr.msra.gmra.mxu1 %vm187_vm2, %v2062_v47  ;;  %2006 = vmatprep.subr.mxu0 %v2185_v5 }
 0x432   :  { %1992 = vmatpush3.xpose.msk.msra.mxu1 %vm187_vm2, %v981_v36  ;;  %1993 = vmatprep.mubr.msk.f32.mxu1 %vm187_vm2, %v985_v43 }
 0x433   :  { %2001 = vmatprep.subr.mxu1 %v2185_v5 }
 0x435   :  { %1994 = vmatmul.mubr.msk.f32.vlgmr.msra.gmra.mxu1 %vm187_vm2, %v987_v45 }
 0x436   :  { %2002 = vmatpush3.xpose.msk.msra.mxu1 %vm187_vm2, %v1150_v48  ;;  %2003 = vmatprep.mubr.msk.f32.mxu1 %vm2189_vm3, %v2185_v5 }
 0x437   :  { %2011 = vmatprep.subr.mxu1 %v2185_v5 }
 0x4ef   :  { %v972_v49 = vpop.f32.mrf.mxu0 }
 0x4f0   :  { %1786 = vrot.lane.b32.xlu1 %v972_v49, %s2182_s24 }
 0x4f1   :  { %v898_v50 = vpop.f32.mrf.mxu1  ;;  %v1990_v51 = vpop.f32.mrf.mxu0 }
 0x4f2   :  { %1784 = vrot.lane.b32.xlu0 %v898_v50, %s2182_s24 }
 0x4f3   :  { %v1985_v52 = vpop.f32.mrf.mxu1 }
 0x4f5   :  { %v1995_v53 = vpop.f32.mrf.mxu1 }
 0x4f6   :  { %2004 = vmatmul.mubr.msk.f32.vlgmr.msra.gmra.mxu1 %vm187_vm2, %v1995_v53 }
 0x4f7   :  { %2012 = vmatpush3.msra.mxu1 %v1150_v48  ;;  %v1061_v54 = vpop.f32.mrf.mxu1  ;;  %2013 = vmatprep.mubr.msk.f32.mxu1 %vm2189_vm3, %v2185_v5 }
 0x4f8   :  { %1999 = vmatmul.mubr.msk.f32.vlgmr.msra.gmra.mxu0 %vm187_vm2, %v1061_v54  ;;  %2021 = vmatprep.subr.mxu1 %v2185_v5 }
 0x4f9   :  { %2007 = vmatpush3.msra.mxu0 %v1072_v46  ;;  %2008 = vmatprep.mubr.msk.f32.mxu0 %vm2189_vm3, %v2185_v5 }
 0x4fa   :  { %2016 = vmatprep.subr.msk.mxu0 %vm187_vm2, %v1383_v55 }
 0x562   :  { %v1787_v23 = vpop.permute.xlu1 %1786 }
 0x564   :  { %v1785_v24 = vpop.permute.xlu0 %1784 }
 0x565   :  { %v1806_v32 = vsel %vm187_vm2, %v2302_v31, %v1785_v24 }
 0x5b6   :  { %v1222_v56 = vpop.f32.mrf.mxu1 }
 0x5b7   :  { %v1227_v57 = vmul.f32 %v1222_v56, %v2280_v16 }
 0x5b8   :  { %v1144_v58 = vpop.f32.mrf.mxu0  ;;  %v2005_v59 = vpop.f32.mrf.mxu1 }
 0x5b9   :  { %2063 = vtanh.f32 %v1227_v57  ;;  %v1226_v60 = vmul.f32 %v1144_v58, %v2282_v18 }
 0x5ba   :  { %v2000_v61 = vpop.f32.mrf.mxu0 }
 0x5bb   :  { %2065 = vtanh.f32 %v1226_v60 }
 0x5c6   :  { %v2064_v63 = vpop.eup %2063 }
 0x5c7   :  { %2014 = vmatmul.mubr.msk.f32.vlgmr.msra.gmra.mxu1 %vm187_vm2, %v2064_v63 }
 0x5c8   :  { %v2066_v2 = vpop.eup %2065  ;;  %2022 = vmatpush3.xpose.msk.msra.mxu1 %vm187_vm2, %v1474_v1  ;;  %2023 = vmatprep.mubr.msk.f32.mxu1 %vm2189_vm3, %v2185_v5 }
 0x5c9   :  { %2009 = vmatmul.mubr.msk.f32.vlgmr.msra.gmra.mxu0 %vm187_vm2, %v2066_v2  ;;  %2031 = vmatprep.subr.mxu1 %v2185_v5 }
 0x5ca   :  { %2017 = vmatpush3.xpose.msk.msra.mxu0 %vm187_vm2, %v1383_v55  ;;  %2018 = vmatprep.mubr.msk.f32.mxu0 %vm187_vm2, %v1387_v62 }
 0x5cb   :  { %2026 = vmatprep.subr.mxu0 %v2185_v5 }
 0x5cd   :  { %2019 = vmatmul.mubr.msk.f32.vlgmr.msra.gmra.mxu0 %vm187_vm2, %v1389_v0 }
 0x5ce   :  { %2027 = vmatpush3.xpose.msk.msra.mxu0 %vm187_vm2, %v1552_v3  ;;  %2028 = vmatprep.mubr.msk.f32.mxu0 %vm2189_vm3, %v2185_v5 }
 0x5cf   :  { %2036 = vmatprep.subr.mxu0 %v2185_v5 }
 0x687   :  { %v1374_v4 = vpop.f32.mrf.mxu1 }
 0x688   :  { %1794 = vrot.lane.b32.xlu1 %v1374_v4, %s2190_s15 }
 0x689   :  { %v1300_v6 = vpop.f32.mrf.mxu0  ;;  %v2015_v7 = vpop.f32.mrf.mxu1 }
 0x68a   :  { %1792 = vrot.lane.b32.xlu0 %v1300_v6, %s2190_s15 }
 0x68b   :  { %v2010_v8 = vpop.f32.mrf.mxu0 }
 0x68d   :  { %v2020_v9 = vpop.f32.mrf.mxu0 }
 0x68e   :  { %2029 = vmatmul.mubr.msk.f32.vlgmr.msra.gmra.mxu0 %vm187_vm2, %v2020_v9 }
 0x68f   :  { %2037 = vmatpush3.msra.mxu0 %v1552_v3  ;;  %v1463_v10 = vpop.f32.mrf.mxu0  ;;  %2038 = vmatprep.mubr.msk.f32.mxu0 %vm2189_vm3, %v2185_v5 }
 0x690   :  { %2024 = vmatmul.mubr.msk.f32.vlgmr.msra.gmra.mxu1 %vm187_vm2, %v1463_v10 }
 0x691   :  { %2032 = vmatpush3.msra.mxu1 %v1474_v1  ;;  %2033 = vmatprep.mubr.msk.f32.mxu1 %vm2189_vm3, %v2185_v5 }
 0x6fa   :  { %v1795_v25 = vpop.permute.xlu1 %1794 }
 0x6fc   :  { %v1793_v26 = vpop.permute.xlu0 %1792 }
 0x6fd   :  { %v1809_v35 = vsel %vm91_vm0, %v1806_v32, %v1793_v26 }
 0x74e   :  { %v1624_v11 = vpop.f32.mrf.mxu0 }
 0x74f   :  { %v1629_v12 = vmul.f32 %v1624_v11, %v2280_v16 }
 0x750   :  { %v1546_v13 = vpop.f32.mrf.mxu1  ;;  %v2030_v14 = vpop.f32.mrf.mxu0 }
 0x751   :  { %2067 = vtanh.f32 %v1629_v12  ;;  %v1628_v15 = vmul.f32 %v1546_v13, %v2282_v18  ;;  %v1807_v18 = vsel %vm187_vm2, %v2300_v30, %v1787_v23 }
 0x752   :  { %v2025_v17 = vpop.f32.mrf.mxu1  ;;  %v1810_v28 = vsel %vm91_vm0, %v1807_v18, %v1795_v25 }
 0x753   :  { %2069 = vtanh.f32 %v1628_v15 }
 0x75e   :  { %v2068_v19 = vpop.eup %2067 }
 0x75f   :  { %2039 = vmatmul.mubr.msk.f32.vlgmr.msra.gmra.mxu0 %vm187_vm2, %v2068_v19 }
 0x760   :  { %v2070_v20 = vpop.eup %2069 }
 0x761   :  { %2034 = vmatmul.mubr.msk.f32.vlgmr.msra.gmra.mxu1 %vm187_vm2, %v2070_v20 }
 0x81f   :  { %v1776_v21 = vpop.f32.mrf.mxu0 }
 0x820   :  { %1802 = vrot.lane.b32.xlu1 %v1776_v21, %s2191_s16 }
 0x821   :  { %v1702_v5 = vpop.f32.mrf.mxu1  ;;  %v2040_v22 = vpop.f32.mrf.mxu0 }
 0x822   :  { %1800 = vrot.lane.b32.xlu0 %v1702_v5, %s2191_s16 }
 0x823   :  { %v2035_v16 = vpop.f32.mrf.mxu1 }
 0x892   :  { %v1803_v29 = vpop.permute.xlu1 %1802 }
 0x893   :  { %v1813_v33 = vsel %vm1811_vm4, %v1810_v28, %v1803_v29 }
 0x894   :  { %v1815_v36 = vadd.f32 %v1813_v33, %v1781_v27  ;;  %v1801_v37 = vpop.permute.xlu0 %1800 }
 0x895   :  { %v1812_v38 = vsel %vm1811_vm4, %v1809_v35, %v1801_v37 }
 0x896   :  { %1818 = vst.msk [vmem:[#allocation3 + $0x8] sm:$0xff] %vm173_vm1, %v1815_v36  ;;  %v1814_v39 = vadd.f32 %v1812_v38, %v1780_v34 }
 0x898   :  { %1817 = vst.msk [vmem:[#allocation3] sm:$0xff] %vm173_vm1, %v1814_v39 }
 0x89d   :  { %v1823_v30 = vld [vmem:[#allocation3 + $0x8] sm:$0xff] }
 0x89e   :  { %v1825_v40 = vmax.f32 %v1823_v30, 0.0 }
 0x89f   :  { %v1822_v41 = vld [vmem:[#allocation3] sm:$0xff] }
 0x8a0   :  { %v1824_v42 = vmax.f32 %v1822_v41, 0.0  ;;  %1827 = vst.msk [vmem:[#allocation12 + $0x8] sm:$0xff] %vm173_vm1, %v1825_v40 }
 0x8a2   :  { %1826 = vst.msk [vmem:[#allocation12] sm:$0xff] %vm173_vm1, %v1824_v42 }
 0x8a3   :  { %2162 = shalt.err (!%p2159_p10)
}
 0x8a4   :  { %1839 = dma.vmem_to_hbm [thread:$0]  %s1834_s18, 256, %s2385_s5, [#allocation6], %s2181_s23, %s2181_s23, %s2182_s24  }
 0x8a5   :  { %2177 = dma.done.wait [#allocation6], 256  }
 0x8a6   :  { %2178 = vsyncadd [#allocation6], 4294967040 }
 0x8a7   :  { %1843 = vsyncpa [#allocation5], 1 }
 0x8a8   :  { %1844 = vsyncpa [#allocation8], 1 }
 0x8a9   :  { %1845 = vsyncpa [#allocation11], 1 }
 0x8aa   :  { %1846 = vsyncpa [#allocation6], 1 }

</bundles_post_ra>
